<compile_context>
chip_gen: v5e
topology: v5e:2x2
jax: 0.10.0
libtpu: 0.0.40
codegen_flags: <defaults>
</compile_context>

<pallas_src>
import functools

import jax
import jax.numpy as jnp
from jax.experimental import pallas as pl
from jax.experimental.pallas import tpu as pltpu

HIDDEN = 10


def mlp_kernel(w1_ref, b1_ref, w2_ref, b2_ref, x_ref, o_ref):
    # w1_ref, b1_ref, w2_ref: (HIDDEN,) f32 in SMEM; b2_ref: (1,) f32 in SMEM.
    # x_ref / o_ref: (block_r, cols) f32 dense batch slabs in VMEM.
    x = x_ref[...]                              # fully dense slab
    acc = jnp.zeros_like(x)
    for k in range(HIDDEN):                     # static unroll, 10 channels
        z = w1_ref[k] * x + b1_ref[k]           # scalar splat + VPU mul-add
        s = 0.5 * jnp.tanh(0.5 * z) + 0.5       # sigmoid, 1 EUP push per vreg
        acc = acc + w2_ref[k] * s               # scalar splat + VPU mul-add
    o_ref[...] = acc + b2_ref[0]                # lane-dense store


@functools.partial(jax.jit, static_argnames=("block_r", "cols"))
def mlp_forward(x, w1, b1, w2, b2, *, block_r=256, cols=512):
    """x: (N, 1) f32 -> (N, 1) f32, same semantics as the nn.Module forward.

    w1, b1, w2: (HIDDEN,) f32  (hidden_layer.weight[:,0], hidden_layer.bias,
                                out_layer.weight[0,:]);  b2: (1,) f32.
    """
    n = x.shape[0]
    x_flat = x.reshape(-1)

    # Slab geometry: cols multiple of 128 lanes (don't exceed what's needed),
    # rows blocked in multiples of 8 sublanes.
    cols_eff = max(128, min(cols, pl.cdiv(n, 128) * 128))
    rows = pl.cdiv(n, cols_eff)
    block_r_eff = max(8, min(block_r, pl.cdiv(rows, 8) * 8))
    rows_pad = pl.cdiv(rows, block_r_eff) * block_r_eff
    n_pad = rows_pad * cols_eff

    # Single pad + reshape (no zeros + dynamic-update-slice pass).
    x_slab = jnp.pad(x_flat, (0, n_pad - n)).reshape(rows_pad, cols_eff)

    grid = (rows_pad // block_r_eff,)
    smem_spec = pl.BlockSpec(memory_space=pltpu.MemorySpace.SMEM)

    out_slab = pl.pallas_call(
        mlp_kernel,
        out_shape=jax.ShapeDtypeStruct((rows_pad, cols_eff), jnp.float32),
        grid=grid,
        in_specs=[
            smem_spec,                                            # w1 (HIDDEN,)
            smem_spec,                                            # b1 (HIDDEN,)
            smem_spec,                                            # w2 (HIDDEN,)
            smem_spec,                                            # b2 (1,)
            pl.BlockSpec((block_r_eff, cols_eff), lambda i: (i, 0)),  # x slab
        ],
        out_specs=pl.BlockSpec((block_r_eff, cols_eff), lambda i: (i, 0)),
        compiler_params=pltpu.CompilerParams(
            dimension_semantics=("parallel",),
        ),
        cost_estimate=pl.CostEstimate(
            flops=6 * HIDDEN * n_pad,
            transcendentals=HIDDEN * n_pad,
            bytes_accessed=8 * n_pad,
        ),
    )(w1, b1, w2, b2, x_slab)

    # Back to the module's (N, 1) convention, dropping pad elements.
    return out_slab.reshape(-1)[:n][:, None]


def init_params(key):
    # Mimic PyTorch nn.Linear default init: U(-1/sqrt(fan_in), 1/sqrt(fan_in)).
    k1, k2, k3, k4 = jax.random.split(key, 4)
    bound1 = 1.0 / jnp.sqrt(1.0)            # hidden_layer: in_features = 1
    bound2 = 1.0 / jnp.sqrt(float(HIDDEN))  # out_layer:    in_features = 10
    w1 = jax.random.uniform(k1, (HIDDEN,), jnp.float32, -bound1, bound1)
    b1 = jax.random.uniform(k2, (HIDDEN,), jnp.float32, -bound1, bound1)
    w2 = jax.random.uniform(k3, (HIDDEN,), jnp.float32, -bound2, bound2)
    b2 = jax.random.uniform(k4, (1,), jnp.float32, -bound2, bound2)
    return w1, b1, w2, b2


if __name__ == "__main__":
    key = jax.random.PRNGKey(0)
    pkey, _ = jax.random.split(key)
    w1, b1, w2, b2 = init_params(pkey)

    # Same input convention as the reference script: x = linspace(0,1,100)[:,None]
    x = jnp.linspace(0.0, 1.0, 100, dtype=jnp.float32)[:, None]

    out = mlp_forward(x, w1, b1, w2, b2)
    jax.block_until_ready(out)

    # Pure-JAX reference: sigmoid(x @ W1.T + b1) @ W2 + b2 in the same layout.
    hidden = jax.nn.sigmoid(x * w1[None, :] + b1[None, :])   # (N, 10)
    ref = hidden @ w2[:, None] + b2[0]                        # (N, 1)

    assert out.shape == (100, 1)
    assert jnp.allclose(out, ref, atol=1e-4, rtol=1e-4), (
        float(jnp.max(jnp.abs(out - ref))))

    print("KERNEL_OK")
</pallas_src>

<mosaic_0001>
module attributes {stable_mosaic.version = 11 : i64} {
  func.func @mlp_kernel(%arg0: i32, %arg1: memref<10xf32, #tpu.memory_space<smem>>, %arg2: memref<10xf32, #tpu.memory_space<smem>>, %arg3: memref<10xf32, #tpu.memory_space<smem>>, %arg4: memref<1xf32, #tpu.memory_space<smem>>, %arg5: memref<8x128xf32, #tpu.memory_space<vmem>>, %arg6: memref<8x128xf32, #tpu.memory_space<vmem>>) attributes {dimension_semantics = [#tpu.dimension_semantics<parallel>], iteration_bounds = array<i64: 1>, scalar_prefetch = 0 : i64, scratch_operands = 0 : i64, tpu.core_type = #tpu.core_type<tc>, window_params = [{transform_indices = @transform_0, window_bounds = array<i64: 10>}, {transform_indices = @transform_1, window_bounds = array<i64: 10>}, {transform_indices = @transform_2, window_bounds = array<i64: 10>}, {transform_indices = @transform_3, window_bounds = array<i64: 1>}, {transform_indices = @transform_4, window_bounds = array<i64: 8, 128>}, {transform_indices = @transform_5, window_bounds = array<i64: 8, 128>}]} {
    %c0 = arith.constant 0 : index
    %c0_0 = arith.constant 0 : index
    %0 = vector.load %arg5[%c0, %c0_0] : memref<8x128xf32, #tpu.memory_space<vmem>>, vector<8x128xf32>
    %cst = arith.constant 0.000000e+00 : f32
    %1 = vector.broadcast %cst : f32 to vector<8x128xf32>
    %c0_1 = arith.constant 0 : index
    %2 = memref.load %arg1[%c0_1] : memref<10xf32, #tpu.memory_space<smem>>
    %3 = vector.broadcast %2 : f32 to vector<8x128xf32>
    %4 = arith.mulf %3, %0 : vector<8x128xf32>
    %c0_2 = arith.constant 0 : index
    %5 = memref.load %arg2[%c0_2] : memref<10xf32, #tpu.memory_space<smem>>
    %6 = vector.broadcast %5 : f32 to vector<8x128xf32>
    %7 = arith.addf %4, %6 : vector<8x128xf32>
    %cst_3 = arith.constant 5.000000e-01 : f32
    %8 = vector.broadcast %cst_3 : f32 to vector<8x128xf32>
    %9 = arith.mulf %8, %7 : vector<8x128xf32>
    %10 = math.tanh %9 : vector<8x128xf32>
    %cst_4 = arith.constant 5.000000e-01 : f32
    %11 = vector.broadcast %cst_4 : f32 to vector<8x128xf32>
    %12 = arith.mulf %11, %10 : vector<8x128xf32>
    %cst_5 = arith.constant 5.000000e-01 : f32
    %13 = vector.broadcast %cst_5 : f32 to vector<8x128xf32>
    %14 = arith.addf %12, %13 : vector<8x128xf32>
    %c0_6 = arith.constant 0 : index
    %15 = memref.load %arg3[%c0_6] : memref<10xf32, #tpu.memory_space<smem>>
    %16 = vector.broadcast %15 : f32 to vector<8x128xf32>
    %17 = arith.mulf %16, %14 : vector<8x128xf32>
    %18 = arith.addf %1, %17 : vector<8x128xf32>
    %c1 = arith.constant 1 : index
    %19 = memref.load %arg1[%c1] : memref<10xf32, #tpu.memory_space<smem>>
    %20 = vector.broadcast %19 : f32 to vector<8x128xf32>
    %21 = arith.mulf %20, %0 : vector<8x128xf32>
    %c1_7 = arith.constant 1 : index
    %22 = memref.load %arg2[%c1_7] : memref<10xf32, #tpu.memory_space<smem>>
    %23 = vector.broadcast %22 : f32 to vector<8x128xf32>
    %24 = arith.addf %21, %23 : vector<8x128xf32>
    %cst_8 = arith.constant 5.000000e-01 : f32
    %25 = vector.broadcast %cst_8 : f32 to vector<8x128xf32>
    %26 = arith.mulf %25, %24 : vector<8x128xf32>
    %27 = math.tanh %26 : vector<8x128xf32>
    %cst_9 = arith.constant 5.000000e-01 : f32
    %28 = vector.broadcast %cst_9 : f32 to vector<8x128xf32>
    %29 = arith.mulf %28, %27 : vector<8x128xf32>
    %cst_10 = arith.constant 5.000000e-01 : f32
    %30 = vector.broadcast %cst_10 : f32 to vector<8x128xf32>
    %31 = arith.addf %29, %30 : vector<8x128xf32>
    %c1_11 = arith.constant 1 : index
    %32 = memref.load %arg3[%c1_11] : memref<10xf32, #tpu.memory_space<smem>>
    %33 = vector.broadcast %32 : f32 to vector<8x128xf32>
    %34 = arith.mulf %33, %31 : vector<8x128xf32>
    %35 = arith.addf %18, %34 : vector<8x128xf32>
    %c2 = arith.constant 2 : index
    %36 = memref.load %arg1[%c2] : memref<10xf32, #tpu.memory_space<smem>>
    %37 = vector.broadcast %36 : f32 to vector<8x128xf32>
    %38 = arith.mulf %37, %0 : vector<8x128xf32>
    %c2_12 = arith.constant 2 : index
    %39 = memref.load %arg2[%c2_12] : memref<10xf32, #tpu.memory_space<smem>>
    %40 = vector.broadcast %39 : f32 to vector<8x128xf32>
    %41 = arith.addf %38, %40 : vector<8x128xf32>
    %cst_13 = arith.constant 5.000000e-01 : f32
    %42 = vector.broadcast %cst_13 : f32 to vector<8x128xf32>
    %43 = arith.mulf %42, %41 : vector<8x128xf32>
    %44 = math.tanh %43 : vector<8x128xf32>
    %cst_14 = arith.constant 5.000000e-01 : f32
    %45 = vector.broadcast %cst_14 : f32 to vector<8x128xf32>
    %46 = arith.mulf %45, %44 : vector<8x128xf32>
    %cst_15 = arith.constant 5.000000e-01 : f32
    %47 = vector.broadcast %cst_15 : f32 to vector<8x128xf32>
    %48 = arith.addf %46, %47 : vector<8x128xf32>
    %c2_16 = arith.constant 2 : index
    %49 = memref.load %arg3[%c2_16] : memref<10xf32, #tpu.memory_space<smem>>
    %50 = vector.broadcast %49 : f32 to vector<8x128xf32>
    %51 = arith.mulf %50, %48 : vector<8x128xf32>
    %52 = arith.addf %35, %51 : vector<8x128xf32>
    %c3 = arith.constant 3 : index
    %53 = memref.load %arg1[%c3] : memref<10xf32, #tpu.memory_space<smem>>
    %54 = vector.broadcast %53 : f32 to vector<8x128xf32>
    %55 = arith.mulf %54, %0 : vector<8x128xf32>
    %c3_17 = arith.constant 3 : index
    %56 = memref.load %arg2[%c3_17] : memref<10xf32, #tpu.memory_space<smem>>
    %57 = vector.broadcast %56 : f32 to vector<8x128xf32>
    %58 = arith.addf %55, %57 : vector<8x128xf32>
    %cst_18 = arith.constant 5.000000e-01 : f32
    %59 = vector.broadcast %cst_18 : f32 to vector<8x128xf32>
    %60 = arith.mulf %59, %58 : vector<8x128xf32>
    %61 = math.tanh %60 : vector<8x128xf32>
    %cst_19 = arith.constant 5.000000e-01 : f32
    %62 = vector.broadcast %cst_19 : f32 to vector<8x128xf32>
    %63 = arith.mulf %62, %61 : vector<8x128xf32>
    %cst_20 = arith.constant 5.000000e-01 : f32
    %64 = vector.broadcast %cst_20 : f32 to vector<8x128xf32>
    %65 = arith.addf %63, %64 : vector<8x128xf32>
    %c3_21 = arith.constant 3 : index
    %66 = memref.load %arg3[%c3_21] : memref<10xf32, #tpu.memory_space<smem>>
    %67 = vector.broadcast %66 : f32 to vector<8x128xf32>
    %68 = arith.mulf %67, %65 : vector<8x128xf32>
    %69 = arith.addf %52, %68 : vector<8x128xf32>
    %c4 = arith.constant 4 : index
    %70 = memref.load %arg1[%c4] : memref<10xf32, #tpu.memory_space<smem>>
    %71 = vector.broadcast %70 : f32 to vector<8x128xf32>
    %72 = arith.mulf %71, %0 : vector<8x128xf32>
    %c4_22 = arith.constant 4 : index
    %73 = memref.load %arg2[%c4_22] : memref<10xf32, #tpu.memory_space<smem>>
    %74 = vector.broadcast %73 : f32 to vector<8x128xf32>
    %75 = arith.addf %72, %74 : vector<8x128xf32>
    %cst_23 = arith.constant 5.000000e-01 : f32
    %76 = vector.broadcast %cst_23 : f32 to vector<8x128xf32>
    %77 = arith.mulf %76, %75 : vector<8x128xf32>
    %78 = math.tanh %77 : vector<8x128xf32>
    %cst_24 = arith.constant 5.000000e-01 : f32
    %79 = vector.broadcast %cst_24 : f32 to vector<8x128xf32>
    %80 = arith.mulf %79, %78 : vector<8x128xf32>
    %cst_25 = arith.constant 5.000000e-01 : f32
    %81 = vector.broadcast %cst_25 : f32 to vector<8x128xf32>
    %82 = arith.addf %80, %81 : vector<8x128xf32>
    %c4_26 = arith.constant 4 : index
    %83 = memref.load %arg3[%c4_26] : memref<10xf32, #tpu.memory_space<smem>>
    %84 = vector.broadcast %83 : f32 to vector<8x128xf32>
    %85 = arith.mulf %84, %82 : vector<8x128xf32>
    %86 = arith.addf %69, %85 : vector<8x128xf32>
    %c5 = arith.constant 5 : index
    %87 = memref.load %arg1[%c5] : memref<10xf32, #tpu.memory_space<smem>>
    %88 = vector.broadcast %87 : f32 to vector<8x128xf32>
    %89 = arith.mulf %88, %0 : vector<8x128xf32>
    %c5_27 = arith.constant 5 : index
    %90 = memref.load %arg2[%c5_27] : memref<10xf32, #tpu.memory_space<smem>>
    %91 = vector.broadcast %90 : f32 to vector<8x128xf32>
    %92 = arith.addf %89, %91 : vector<8x128xf32>
    %cst_28 = arith.constant 5.000000e-01 : f32
    %93 = vector.broadcast %cst_28 : f32 to vector<8x128xf32>
    %94 = arith.mulf %93, %92 : vector<8x128xf32>
    %95 = math.tanh %94 : vector<8x128xf32>
    %cst_29 = arith.constant 5.000000e-01 : f32
    %96 = vector.broadcast %cst_29 : f32 to vector<8x128xf32>
    %97 = arith.mulf %96, %95 : vector<8x128xf32>
    %cst_30 = arith.constant 5.000000e-01 : f32
    %98 = vector.broadcast %cst_30 : f32 to vector<8x128xf32>
    %99 = arith.addf %97, %98 : vector<8x128xf32>
    %c5_31 = arith.constant 5 : index
    %100 = memref.load %arg3[%c5_31] : memref<10xf32, #tpu.memory_space<smem>>
    %101 = vector.broadcast %100 : f32 to vector<8x128xf32>
    %102 = arith.mulf %101, %99 : vector<8x128xf32>
    %103 = arith.addf %86, %102 : vector<8x128xf32>
    %c6 = arith.constant 6 : index
    %104 = memref.load %arg1[%c6] : memref<10xf32, #tpu.memory_space<smem>>
    %105 = vector.broadcast %104 : f32 to vector<8x128xf32>
    %106 = arith.mulf %105, %0 : vector<8x128xf32>
    %c6_32 = arith.constant 6 : index
    %107 = memref.load %arg2[%c6_32] : memref<10xf32, #tpu.memory_space<smem>>
    %108 = vector.broadcast %107 : f32 to vector<8x128xf32>
    %109 = arith.addf %106, %108 : vector<8x128xf32>
    %cst_33 = arith.constant 5.000000e-01 : f32
    %110 = vector.broadcast %cst_33 : f32 to vector<8x128xf32>
    %111 = arith.mulf %110, %109 : vector<8x128xf32>
    %112 = math.tanh %111 : vector<8x128xf32>
    %cst_34 = arith.constant 5.000000e-01 : f32
    %113 = vector.broadcast %cst_34 : f32 to vector<8x128xf32>
    %114 = arith.mulf %113, %112 : vector<8x128xf32>
    %cst_35 = arith.constant 5.000000e-01 : f32
    %115 = vector.broadcast %cst_35 : f32 to vector<8x128xf32>
    %116 = arith.addf %114, %115 : vector<8x128xf32>
    %c6_36 = arith.constant 6 : index
    %117 = memref.load %arg3[%c6_36] : memref<10xf32, #tpu.memory_space<smem>>
    %118 = vector.broadcast %117 : f32 to vector<8x128xf32>
    %119 = arith.mulf %118, %116 : vector<8x128xf32>
    %120 = arith.addf %103, %119 : vector<8x128xf32>
    %c7 = arith.constant 7 : index
    %121 = memref.load %arg1[%c7] : memref<10xf32, #tpu.memory_space<smem>>
    %122 = vector.broadcast %121 : f32 to vector<8x128xf32>
    %123 = arith.mulf %122, %0 : vector<8x128xf32>
    %c7_37 = arith.constant 7 : index
    %124 = memref.load %arg2[%c7_37] : memref<10xf32, #tpu.memory_space<smem>>
    %125 = vector.broadcast %124 : f32 to vector<8x128xf32>
    %126 = arith.addf %123, %125 : vector<8x128xf32>
    %cst_38 = arith.constant 5.000000e-01 : f32
    %127 = vector.broadcast %cst_38 : f32 to vector<8x128xf32>
    %128 = arith.mulf %127, %126 : vector<8x128xf32>
    %129 = math.tanh %128 : vector<8x128xf32>
    %cst_39 = arith.constant 5.000000e-01 : f32
    %130 = vector.broadcast %cst_39 : f32 to vector<8x128xf32>
    %131 = arith.mulf %130, %129 : vector<8x128xf32>
    %cst_40 = arith.constant 5.000000e-01 : f32
    %132 = vector.broadcast %cst_40 : f32 to vector<8x128xf32>
    %133 = arith.addf %131, %132 : vector<8x128xf32>
    %c7_41 = arith.constant 7 : index
    %134 = memref.load %arg3[%c7_41] : memref<10xf32, #tpu.memory_space<smem>>
    %135 = vector.broadcast %134 : f32 to vector<8x128xf32>
    %136 = arith.mulf %135, %133 : vector<8x128xf32>
    %137 = arith.addf %120, %136 : vector<8x128xf32>
    %c8 = arith.constant 8 : index
    %138 = memref.load %arg1[%c8] : memref<10xf32, #tpu.memory_space<smem>>
    %139 = vector.broadcast %138 : f32 to vector<8x128xf32>
    %140 = arith.mulf %139, %0 : vector<8x128xf32>
    %c8_42 = arith.constant 8 : index
    %141 = memref.load %arg2[%c8_42] : memref<10xf32, #tpu.memory_space<smem>>
    %142 = vector.broadcast %141 : f32 to vector<8x128xf32>
    %143 = arith.addf %140, %142 : vector<8x128xf32>
    %cst_43 = arith.constant 5.000000e-01 : f32
    %144 = vector.broadcast %cst_43 : f32 to vector<8x128xf32>
    %145 = arith.mulf %144, %143 : vector<8x128xf32>
    %146 = math.tanh %145 : vector<8x128xf32>
    %cst_44 = arith.constant 5.000000e-01 : f32
    %147 = vector.broadcast %cst_44 : f32 to vector<8x128xf32>
    %148 = arith.mulf %147, %146 : vector<8x128xf32>
    %cst_45 = arith.constant 5.000000e-01 : f32
    %149 = vector.broadcast %cst_45 : f32 to vector<8x128xf32>
    %150 = arith.addf %148, %149 : vector<8x128xf32>
    %c8_46 = arith.constant 8 : index
    %151 = memref.load %arg3[%c8_46] : memref<10xf32, #tpu.memory_space<smem>>
    %152 = vector.broadcast %151 : f32 to vector<8x128xf32>
    %153 = arith.mulf %152, %150 : vector<8x128xf32>
    %154 = arith.addf %137, %153 : vector<8x128xf32>
    %c9 = arith.constant 9 : index
    %155 = memref.load %arg1[%c9] : memref<10xf32, #tpu.memory_space<smem>>
    %156 = vector.broadcast %155 : f32 to vector<8x128xf32>
    %157 = arith.mulf %156, %0 : vector<8x128xf32>
    %c9_47 = arith.constant 9 : index
    %158 = memref.load %arg2[%c9_47] : memref<10xf32, #tpu.memory_space<smem>>
    %159 = vector.broadcast %158 : f32 to vector<8x128xf32>
    %160 = arith.addf %157, %159 : vector<8x128xf32>
    %cst_48 = arith.constant 5.000000e-01 : f32
    %161 = vector.broadcast %cst_48 : f32 to vector<8x128xf32>
    %162 = arith.mulf %161, %160 : vector<8x128xf32>
    %163 = math.tanh %162 : vector<8x128xf32>
    %cst_49 = arith.constant 5.000000e-01 : f32
    %164 = vector.broadcast %cst_49 : f32 to vector<8x128xf32>
    %165 = arith.mulf %164, %163 : vector<8x128xf32>
    %cst_50 = arith.constant 5.000000e-01 : f32
    %166 = vector.broadcast %cst_50 : f32 to vector<8x128xf32>
    %167 = arith.addf %165, %166 : vector<8x128xf32>
    %c9_51 = arith.constant 9 : index
    %168 = memref.load %arg3[%c9_51] : memref<10xf32, #tpu.memory_space<smem>>
    %169 = vector.broadcast %168 : f32 to vector<8x128xf32>
    %170 = arith.mulf %169, %167 : vector<8x128xf32>
    %171 = arith.addf %154, %170 : vector<8x128xf32>
    %c0_52 = arith.constant 0 : index
    %172 = memref.load %arg4[%c0_52] : memref<1xf32, #tpu.memory_space<smem>>
    %173 = vector.broadcast %172 : f32 to vector<8x128xf32>
    %174 = arith.addf %171, %173 : vector<8x128xf32>
    %c0_53 = arith.constant 0 : index
    %c0_54 = arith.constant 0 : index
    %175 = vector.load %arg6[%c0_53, %c0_54] : memref<8x128xf32, #tpu.memory_space<vmem>>, vector<8x128xf32>
    tpu.vector_store %arg6[%c0_53, %c0_54], %174 {strides = array<i32>} : memref<8x128xf32, #tpu.memory_space<vmem>>, vector<8x128xf32>,
    return
  }
  func.func @transform_0(%arg0: i32) -> i32 {
    %c0_i32 = arith.constant 0 : i32
    %c0_i32_0 = arith.constant 0 : i32
    return %c0_i32 : i32
  }
  func.func @transform_1(%arg0: i32) -> i32 {
    %c0_i32 = arith.constant 0 : i32
    %c0_i32_0 = arith.constant 0 : i32
    return %c0_i32 : i32
  }
  func.func @transform_2(%arg0: i32) -> i32 {
    %c0_i32 = arith.constant 0 : i32
    %c0_i32_0 = arith.constant 0 : i32
    return %c0_i32 : i32
  }
  func.func @transform_3(%arg0: i32) -> i32 {
    %c0_i32 = arith.constant 0 : i32
    %c0_i32_0 = arith.constant 0 : i32
    return %c0_i32 : i32
  }
  func.func @transform_4(%arg0: i32) -> (i32, i32) {
    %c0_i32 = arith.constant 0 : i32
    %c0_i32_0 = arith.constant 0 : i32
    return %arg0, %c0_i32 : i32, i32
  }
  func.func @transform_5(%arg0: i32) -> (i32, i32) {
    %c0_i32 = arith.constant 0 : i32
    %c0_i32_0 = arith.constant 0 : i32
    return %arg0, %c0_i32 : i32, i32
  }
}

</mosaic_0001>

<bundles_post_ra>
// kernel: mlp_forward.1
= control target key start
LH: loop header
LB: loop body
LE: loop exit
PB: predicated region body
PF: predicated region fallthrough
CT: control target
= control target key end

     0   :  { %11 = vsyncpa [#allocation4], 0  ;;  %s403_s0 = inlined_call_operand.vmem [shape: f32[10], index: 0, kind: input, shape index: {}]   ;;  %s404_s1 = inlined_call_operand.vmem [shape: f32[10], index: 1, kind: input, shape index: {}]   ;;  %s405_s2 = inlined_call_operand.vmem [shape: f32[10], index: 2, kind: input, shape index: {}]   ;;  %s406_s3 = inlined_call_operand.<no memory space> [shape: f32[1], index: 3, kind: input, shape index: {}]   ;;  %s407_s4 = inlined_call_operand.vmem [shape: f32[8,128], index: 4, kind: input, shape index: {}]   ;;  %s408_s5 = inlined_call_operand.vmem [shape: f32[8,128], index: 5, kind: output, shape index: {}]  }
   0x1   :  { %12 = vsyncpa [#allocation6], 0  ;;  %s27_s20 = sshll.u32 %s404_s1, 4  ;;  %s18_s23 = sshll.u32 %s403_s0, 4  ;;  %s28_s20 = int_to_ptr.vmem [resolvable:$true] %s27_s20  ;;  %s19_s23 = int_to_ptr.vmem [resolvable:$true] %s18_s23 }
   0x2   :  { %s298_s24 = smov [#allocation5]   ;;  %s299_s25 = smov [#allocation3]  }
   0x3   :  { %30 = dma.vmem_to_smem %s28_s20, 16, %s298_s24, [#allocation6]  }
   0x4   :  { %21 = dma.vmem_to_smem %s19_s23, 16, %s299_s25, [#allocation4]  }
   0x5   :  { %s36_s28 = sshll.u32 %s405_s2, 4  ;;  %s300_s29 = smov [#allocation7]   ;;  %s37_s28 = int_to_ptr.vmem [resolvable:$true] %s36_s28 }
   0x6   :  { %39 = dma.vmem_to_smem %s37_s28, 16, %s300_s29, [#allocation6]  }
   0x7   :  { %294 = dma.done.wait [#allocation4], 16  }
   0x8   :  { %295 = vsyncadd [#allocation4], 4294967280 }
   0x9   :  { %296 = dma.done.wait [#allocation6], 32  }
   0xa   :  { %297 = vsyncadd [#allocation6], 4294967264 }
   0xb   :  { %56 = sfence }
   0xc   :  { %s58_s1 = sld [smem:[#allocation3]]  ;;  %v343_v0 = vld [vmem:[%s407_s4] sm:$0xff] }
   0xd   :  { %s61_s30 = sld [smem:[#allocation5]] }
   0xe   :  { %s208_s0 = sld [smem:[#allocation3 + $0x1]] }
   0xf   :  { %s209_s8 = sld [smem:[#allocation5 + $0x1]] }
  0x10   :  { %s211_s9 = sld [smem:[#allocation3 + $0x2]] }
  0x11   :  { %s212_s2 = sld [smem:[#allocation5 + $0x2]] }
  0x12   :  { %v59_v1 = vstv %s58_s1  ;;  %s214_s10 = sld [smem:[#allocation3 + $0x3]] }
  0x13   :  { %v60_v2 = vmul.f32 %v59_v1, %v343_v0  ;;  %v62_v3 = vstv %s61_s30  ;;  %s215_s11 = sld [smem:[#allocation5 + $0x3]] }
  0x14   :  { %v73_v5 = vstv %s208_s0  ;;  %s347_s12 = sld [smem:[#allocation7]] }
  0x15   :  { %v63_v4 = vadd.f32 %v62_v3, %v60_v2  ;;  %v74_v6 = vmul.f32 %v73_v5, %v343_v0  ;;  %v76_v7 = vstv %s209_s8  ;;  %s217_s4 = sld [smem:[#allocation3 + $0x4]] }
  0x16   :  { %v87_v10 = vstv %s211_s9  ;;  %s218_s13 = sld [smem:[#allocation5 + $0x4]] }
  0x17   :  { %v64_v8 = vmul.f32 0.5, %v63_v4  ;;  %v77_v9 = vadd.f32 %v76_v7, %v74_v6  ;;  %v88_v11 = vmul.f32 %v87_v10, %v343_v0  ;;  %v90_v12 = vstv %s212_s2  ;;  %s350_s14 = sld [smem:[#allocation7 + $0x1]] }
  0x18   :  { %v101_v15 = vstv %s214_s10  ;;  %s220_s15 = sld [smem:[#allocation3 + $0x5]] }
  0x19   :  { %238 = vtanh.f32 %v64_v8  ;;  %v78_v13 = vmul.f32 0.5, %v77_v9  ;;  %v91_v14 = vadd.f32 %v90_v12, %v88_v11  ;;  %v102_v16 = vmul.f32 %v101_v15, %v343_v0  ;;  %s221_s16 = sld [smem:[#allocation5 + $0x5]] }
  0x1a   :  { %v104_v17 = vstv %s215_s11  ;;  %s353_s17 = sld [smem:[#allocation7 + $0x2]]  ;;  %v69_v26 = vstv %s347_s12 }
  0x1b   :  { %240 = vtanh.f32 %v78_v13  ;;  %v92_v18 = vmul.f32 0.5, %v91_v14  ;;  %v105_v19 = vadd.f32 %v104_v17, %v102_v16  ;;  %v115_v20 = vstv %s217_s4  ;;  %s223_s18 = sld [smem:[#allocation3 + $0x6]] }
  0x1c   :  { %v116_v22 = vmul.f32 %v115_v20, %v343_v0  ;;  %v118_v23 = vstv %s218_s13  ;;  %s356_s19 = sld [smem:[#allocation5 + $0x6]] }
  0x1d   :  { %242 = vtanh.f32 %v92_v18  ;;  %v106_v25 = vmul.f32 0.5, %v105_v19  ;;  %s358_s20 = sld [smem:[#allocation7 + $0x3]]  ;;  %v83_v36 = vstv %s350_s14 }
  0x1e   :  { %v119_v27 = vadd.f32 %v118_v23, %v116_v22  ;;  %v129_v28 = vstv %s220_s15  ;;  %s361_s21 = sld [smem:[#allocation3 + $0x7]] }
  0x1f   :  { %v239_v21 = vpop.eup %238  ;;  %244 = vtanh.f32 %v106_v25  ;;  %v130_v31 = vmul.f32 %v129_v28, %v343_v0  ;;  %v132_v32 = vstv %s221_s16  ;;  %s364_s22 = sld [smem:[#allocation5 + $0x7]] }
  0x20   :  { %v66_v24 = vmul.f32 0.5, %v239_v21  ;;  %v120_v34 = vmul.f32 0.5, %v119_v27  ;;  %s366_s23 = sld [smem:[#allocation7 + $0x4]]  ;;  %v97_v46 = vstv %s353_s17 }
  0x21   :  { %v241_v29 = vpop.eup %240  ;;  %v133_v37 = vadd.f32 %v132_v32, %v130_v31  ;;  %v143_v38 = vstv %s223_s18  ;;  %s369_s24 = sld [smem:[#allocation3 + $0x8]] }
  0x22   :  { %v67_v30 = vadd.f32 0.5, %v66_v24  ;;  %v80_v33 = vmul.f32 0.5, %v241_v29  ;;  %246 = vtanh.f32 %v120_v34  ;;  %v144_v41 = vmul.f32 %v143_v38, %v343_v0  ;;  %s373_s25 = sld [smem:[#allocation5 + $0x8]] }
  0x23   :  { %v243_v39 = vpop.eup %242  ;;  %v146_v42 = vstv %s356_s19  ;;  %v134_v44 = vmul.f32 0.5, %v133_v37  ;;  %s375_s26 = sld [smem:[#allocation7 + $0x5]]  ;;  %v111_v57 = vstv %s358_s20 }
  0x24   :  { %v70_v35 = vmul.f32 %v69_v26, %v67_v30  ;;  %v81_v40 = vadd.f32 0.5, %v80_v33  ;;  %v94_v43 = vmul.f32 0.5, %v243_v39  ;;  %v147_v47 = vadd.f32 %v146_v42, %v144_v41  ;;  %s379_s27 = sld [smem:[#allocation3 + $0x9]] }
  0x25   :  { %v157_v48 = vstv %s361_s21  ;;  %v245_v49 = vpop.eup %244  ;;  %248 = vtanh.f32 %v134_v44  ;;  %v160_v52 = vstv %s364_s22  ;;  %s383_s28 = sld [smem:[#allocation5 + $0x9]] }
  0x26   :  { %v84_v45 = vmul.f32 %v83_v36, %v81_v40  ;;  %v95_v50 = vadd.f32 0.5, %v94_v43  ;;  %v158_v51 = vmul.f32 %v157_v48, %v343_v0  ;;  %v108_v54 = vmul.f32 0.5, %v245_v49  ;;  %s387_s29 = sld [smem:[#allocation7 + $0x6]] }
  0x27   :  { %v148_v55 = vmul.f32 0.5, %v147_v47  ;;  %v171_v59 = vstv %s369_s24  ;;  %v125_v5 = vstv %s366_s23  ;;  %s228_s1 = sld [smem:[#allocation7 + $0x7]] }
  0x28   :  { %v85_v53 = vadd.f32 %v84_v45, %v70_v35  ;;  %v98_v56 = vmul.f32 %v97_v46, %v95_v50  ;;  %v161_v58 = vadd.f32 %v160_v52, %v158_v51  ;;  %v247_v60 = vpop.eup %246  ;;  %v109_v61 = vadd.f32 0.5, %v108_v54  ;;  %s231_s30 = sld [smem:[#allocation7 + $0x8]] }
  0x29   :  { %250 = vtanh.f32 %v148_v55  ;;  %v172_v62 = vmul.f32 %v171_v59, %v343_v0  ;;  %v174_v63 = vstv %s373_s25  ;;  %v122_v2 = vmul.f32 0.5, %v247_v60  ;;  %s234_s0 = sld [smem:[#allocation7 + $0x9]] }
  0x2a   :  { %v99_v1 = vadd.f32 %v98_v56, %v85_v53  ;;  %v162_v3 = vmul.f32 0.5, %v161_v58  ;;  %v112_v4 = vmul.f32 %v111_v57, %v109_v61  ;;  %v185_v7 = vstv %s379_s27 }
  0x2b   :  { %v175_v6 = vadd.f32 %v174_v63, %v172_v62  ;;  %v249_v8 = vpop.eup %248  ;;  %v123_v9 = vadd.f32 0.5, %v122_v2  ;;  %v186_v10 = vmul.f32 %v185_v7, %v343_v0  ;;  %v188_v11 = vstv %s383_s28 }
  0x2c   :  { %252 = vtanh.f32 %v162_v3  ;;  %v113_v12 = vadd.f32 %v112_v4, %v99_v1  ;;  %v136_v13 = vmul.f32 0.5, %v249_v8  ;;  %v139_v16 = vstv %s375_s26 }
  0x2d   :  { %v176_v14 = vmul.f32 0.5, %v175_v6  ;;  %v126_v15 = vmul.f32 %v125_v5, %v123_v9  ;;  %v189_v17 = vadd.f32 %v188_v11, %v186_v10  ;;  %v153_v24 = vstv %s387_s29 }
  0x2e   :  { %v137_v19 = vadd.f32 0.5, %v136_v13  ;;  %v167_v29 = vstv %s228_s1  ;;  %v181_v35 = vstv %s231_s30  ;;  %v199_v45 = vstv %s406_s3 }
  0x2f   :  { %v251_v18 = vpop.eup %250  ;;  %254 = vtanh.f32 %v176_v14  ;;  %v127_v20 = vadd.f32 %v126_v15, %v113_v12  ;;  %v190_v22 = vmul.f32 0.5, %v189_v17  ;;  %v195_v41 = vstv %s234_s0 }
  0x30   :  { %v150_v21 = vmul.f32 0.5, %v251_v18  ;;  %v140_v23 = vmul.f32 %v139_v16, %v137_v19 }
  0x31   :  { %256 = vtanh.f32 %v190_v22 }
  0x32   :  { %v253_v25 = vpop.eup %252  ;;  %v151_v26 = vadd.f32 0.5, %v150_v21  ;;  %v141_v0 = vadd.f32 %v140_v23, %v127_v20 }
  0x33   :  { %v164_v27 = vmul.f32 0.5, %v253_v25 }
  0x34   :  { %v154_v28 = vmul.f32 %v153_v24, %v151_v26 }
  0x35   :  { %v255_v30 = vpop.eup %254  ;;  %v165_v31 = vadd.f32 0.5, %v164_v27 }
  0x36   :  { %v155_v32 = vadd.f32 %v154_v28, %v141_v0  ;;  %v178_v33 = vmul.f32 0.5, %v255_v30 }
  0x37   :  { %v168_v34 = vmul.f32 %v167_v29, %v165_v31  ;;  %v257_v36 = vpop.eup %256 }
  0x38   :  { %v179_v37 = vadd.f32 0.5, %v178_v33  ;;  %v192_v39 = vmul.f32 0.5, %v257_v36 }
  0x39   :  { %v169_v38 = vadd.f32 %v168_v34, %v155_v32 }
  0x3a   :  { %v182_v40 = vmul.f32 %v181_v35, %v179_v37  ;;  %v193_v42 = vadd.f32 0.5, %v192_v39 }
  0x3c   :  { %v183_v43 = vadd.f32 %v182_v40, %v169_v38  ;;  %v196_v44 = vmul.f32 %v195_v41, %v193_v42 }
  0x3e   :  { %v197_v46 = vadd.f32 %v196_v44, %v183_v43 }
  0x40   :  { %v200_v47 = vadd.f32 %v199_v45, %v197_v46 }
  0x42   :  { %201 = vst [vmem:[%s408_s5] sm:$0xff] %v200_v47 }
  0x43   :  { %206 = vsyncpa [#allocation4], 1 }
  0x44   :  { %207 = vsyncpa [#allocation6], 1 }

</bundles_post_ra>
